<compile_context>
chip_gen: v6e
topology: v6e:2x2x1
jax: 0.10.0
libtpu: 0.0.40
codegen_flags: <defaults>
</compile_context>

<pallas_src>
import jax
import jax.numpy as jnp
import numpy as np
from jax.experimental import pallas as pl
from jax.experimental.pallas import tpu as pltpu


# ---------------------------------------------------------------------------
# Generic tiled linear kernel: out = x @ w + b
# Used for the hoisted input projection and the hoisted (vocab-tiled) decoder.
# ---------------------------------------------------------------------------
def _linear_kernel(x_ref, w_ref, b_ref, o_ref):
    o_ref[...] = (jnp.dot(x_ref[...], w_ref[...],
                          preferred_element_type=jnp.float32)
                  + b_ref[...]).astype(o_ref.dtype)


def _pick_tile(n, pref, align):
    """Largest tile <= pref that divides n and is a multiple of align, else n."""
    t = min(n, pref)
    t -= t % align
    while t > 0:
        if n % t == 0:
            return t
        t -= align
    return n


def linear_pallas(x, w, b, *, tm_pref=256, tn_pref=1024):
    """x: (M, K) f32, w: (K, N) f32, b: (1, N) f32 -> (M, N) f32."""
    M, K = x.shape
    Kw, N = w.shape
    assert K == Kw
    tm = _pick_tile(M, tm_pref, 8)
    tn = _pick_tile(N, tn_pref, 128)
    grid = (M // tm, N // tn)
    return pl.pallas_call(
        _linear_kernel,
        out_shape=jax.ShapeDtypeStruct((M, N), jnp.float32),
        grid_spec=pltpu.PrefetchScalarGridSpec(
            num_scalar_prefetch=0,
            grid=grid,
            in_specs=[
                pl.BlockSpec((tm, K), lambda i, j: (i, 0)),
                pl.BlockSpec((K, tn), lambda i, j: (0, j)),
                pl.BlockSpec((1, tn), lambda i, j: (0, j)),
            ],
            out_specs=pl.BlockSpec((tm, tn), lambda i, j: (i, j)),
        ),
        compiler_params=pltpu.CompilerParams(
            dimension_semantics=("parallel", "parallel")),
    )(x, w, b)


# ---------------------------------------------------------------------------
# Recurrent LSTM kernel: grid iterates over chunks of timesteps; only the
# unavoidable h @ W_hh^T matmul + gate elementwise math stays inside.
# ---------------------------------------------------------------------------
def _lstm_chunk_kernel(xp_ref, whh_ref, h0_ref, c0_ref,
                       hseq_ref, hN_ref, cN_ref):
    # hN_ref / cN_ref map to the same output block at every grid step, so they
    # stay VMEM-resident and serve directly as the recurrent carry.
    @pl.when(pl.program_id(0) == 0)
    def _():
        hN_ref[...] = h0_ref[...]
        cN_ref[...] = c0_ref[...]

    H = hN_ref.shape[-1]
    T = xp_ref.shape[0]          # timesteps in this chunk (static)

    def step(tl, carry):
        h = hN_ref[...]
        c = cN_ref[...]
        # gates = xproj_t + h @ W_hh^T   (input projection + bias pre-computed)
        gates = xp_ref[tl] + jnp.dot(h, whh_ref[...],
                                     preferred_element_type=jnp.float32)
        i_g = jax.nn.sigmoid(gates[:, 0 * H:1 * H])
        f_g = jax.nn.sigmoid(gates[:, 1 * H:2 * H])
        g_g = jnp.tanh(gates[:, 2 * H:3 * H])
        o_g = jax.nn.sigmoid(gates[:, 3 * H:4 * H])
        c_new = f_g * c + i_g * g_g
        h_new = o_g * jnp.tanh(c_new)
        cN_ref[...] = c_new
        hN_ref[...] = h_new
        hseq_ref[tl] = h_new.astype(hseq_ref.dtype)
        return carry

    jax.lax.fori_loop(0, T, step, 0, unroll=True)


def _pick_chunk(seq, max_chunk=16):
    t = min(seq, max_chunk)
    while seq % t:
        t -= 1
    return t


def lstm_recurrence_pallas(xproj, whh_t, h0, c0):
    """xproj: (seq, batch, 4*nhid); whh_t: (nhid, 4*nhid); h0/c0: (batch, nhid)."""
    seq, batch, gdim = xproj.shape
    nhid = whh_t.shape[0]
    t_chunk = _pick_chunk(seq)

    out_shapes = (
        jax.ShapeDtypeStruct((seq, batch, nhid), jnp.float32),   # h_t for all t
        jax.ShapeDtypeStruct((batch, nhid), jnp.float32),        # h_N
        jax.ShapeDtypeStruct((batch, nhid), jnp.float32),        # c_N
    )
    return pl.pallas_call(
        _lstm_chunk_kernel,
        out_shape=out_shapes,
        grid_spec=pltpu.PrefetchScalarGridSpec(
            num_scalar_prefetch=0,
            grid=(seq // t_chunk,),
            in_specs=[
                pl.BlockSpec((t_chunk, batch, gdim), lambda s: (s, 0, 0)),  # xproj
                pl.BlockSpec((nhid, gdim), lambda s: (0, 0)),               # W_hh^T
                pl.BlockSpec((batch, nhid), lambda s: (0, 0)),              # h0
                pl.BlockSpec((batch, nhid), lambda s: (0, 0)),              # c0
            ],
            out_specs=[
                pl.BlockSpec((t_chunk, batch, nhid), lambda s: (s, 0, 0)),
                pl.BlockSpec((batch, nhid), lambda s: (0, 0)),
                pl.BlockSpec((batch, nhid), lambda s: (0, 0)),
            ],
        ),
        compiler_params=pltpu.CompilerParams(
            dimension_semantics=("arbitrary",)),    # sequential recurrence
    )(xproj, whh_t, h0, c0)


# ---------------------------------------------------------------------------
# Full forward pass (encoder -> LSTM-with-topic -> decoder).
# ---------------------------------------------------------------------------
def rnn_model_forward(tokens, hidden, top, params):
    """tokens: (seq, batch) int32; hidden: (h0, c0); top: (batch, topic_dim)."""
    enc_w = params["enc_w"]            # (ntoken, ninp)
    wih_t = params["wih_t"]            # (ninp+topic_dim, 4*nhid)
    whh_t = params["whh_t"]            # (nhid, 4*nhid)
    b_lstm = params["b_lstm"]          # (1, 4*nhid)
    wdec_t = params["wdec_t"]          # (nhid, ntoken)
    b_dec = params["b_dec"]            # (1, ntoken)

    h0, c0 = hidden
    seq, batch = tokens.shape
    nhid = whh_t.shape[0]
    ntoken = wdec_t.shape[1]

    # Encoder (embedding gather) + dropout-as-identity.
    emb = jnp.take(enc_w, tokens, axis=0)                       # (seq, batch, ninp)
    top_b = jnp.broadcast_to(top[None, :, :], (seq, batch, top.shape[-1]))
    x_in = jnp.concatenate([emb, top_b], axis=-1)               # (seq, batch, ninp+topic)

    # Hoisted input projection: one (seq*batch, insz)@(insz, 4*nhid) matmul.
    xproj = linear_pallas(x_in.reshape(seq * batch, -1), wih_t, b_lstm)
    xproj = xproj.reshape(seq, batch, 4 * nhid)

    # Sequential LSTM recurrence (chunked grid, carry in output refs).
    h_seq, hN, cN = lstm_recurrence_pallas(xproj, whh_t, h0, c0)

    # Hoisted, vocab-tiled decoder over all timesteps at once.
    logits = linear_pallas(h_seq.reshape(seq * batch, nhid), wdec_t, b_dec,
                           tn_pref=2048)
    decoded = logits.reshape(seq, batch, ntoken)
    return decoded, (hN, cN)


# ---------------------------------------------------------------------------
# Pure-JAX reference matching the kernel semantics.
# ---------------------------------------------------------------------------
def reference_forward(tokens, hidden, top, params):
    enc_w, wih_t, whh_t = params["enc_w"], params["wih_t"], params["whh_t"]
    b_lstm, wdec_t, b_dec = params["b_lstm"], params["wdec_t"], params["b_dec"]
    nhid = whh_t.shape[0]
    seq, batch = tokens.shape
    emb = jnp.take(enc_w, tokens, axis=0)
    top_b = jnp.broadcast_to(top[None, :, :], (seq, batch, top.shape[-1]))
    x_in = jnp.concatenate([emb, top_b], axis=-1)
    h, c = hidden

    def step(carry, x_t):
        h, c = carry
        gates = x_t @ wih_t + h @ whh_t + b_lstm
        i = jax.nn.sigmoid(gates[:, 0 * nhid:1 * nhid])
        f = jax.nn.sigmoid(gates[:, 1 * nhid:2 * nhid])
        g = jnp.tanh(gates[:, 2 * nhid:3 * nhid])
        o = jax.nn.sigmoid(gates[:, 3 * nhid:4 * nhid])
        c = f * c + i * g
        h = o * jnp.tanh(c)
        return (h, c), h

    (h, c), hs = jax.lax.scan(step, (h, c), x_in)
    dec = hs.reshape(seq * batch, nhid) @ wdec_t + b_dec
    return dec.reshape(seq, batch, -1), (h, c)


def make_params(key, ntoken, ninp, nhid, topic_dim):
    k = jax.random.split(key, 6)
    initrange = 0.1
    enc_w = jax.random.uniform(k[0], (ntoken, ninp), jnp.float32, -initrange, initrange)
    wdec = jax.random.uniform(k[1], (ntoken, nhid), jnp.float32, -initrange, initrange)
    b_dec = jnp.zeros((1, ntoken), jnp.float32)
    stdv = 1.0 / np.sqrt(nhid)
    insz = ninp + topic_dim
    wih = jax.random.uniform(k[2], (4 * nhid, insz), jnp.float32, -stdv, stdv)
    whh = jax.random.uniform(k[3], (4 * nhid, nhid), jnp.float32, -stdv, stdv)
    b_ih = jax.random.uniform(k[4], (4 * nhid,), jnp.float32, -stdv, stdv)
    b_hh = jax.random.uniform(k[5], (4 * nhid,), jnp.float32, -stdv, stdv)
    return {
        "enc_w": enc_w,
        "wih_t": wih.T,                       # (insz, 4*nhid)
        "whh_t": whh.T,                       # (nhid, 4*nhid)
        "b_lstm": (b_ih + b_hh)[None, :],     # (1, 4*nhid)
        "wdec_t": wdec.T,                     # (nhid, ntoken)
        "b_dec": b_dec,                       # (1, ntoken)
    }


if __name__ == "__main__":
    seq, batch = 8, 8
    ntoken, ninp, nhid, topic_dim = 256, 128, 128, 128

    key = jax.random.PRNGKey(0)
    kp, kt, ktop = jax.random.split(key, 3)
    params = make_params(kp, ntoken, ninp, nhid, topic_dim)
    tokens = jax.random.randint(kt, (seq, batch), 0, ntoken, dtype=jnp.int32)
    top = jax.random.uniform(ktop, (batch, topic_dim), jnp.float32, -0.1, 0.1)
    hidden = (jnp.zeros((batch, nhid), jnp.float32),
              jnp.zeros((batch, nhid), jnp.float32))   # init_hidden (LSTM)

    decoded, (hN, cN) = rnn_model_forward(tokens, hidden, top, params)
    jax.block_until_ready((decoded, hN, cN))

    dec_ref, (h_ref, c_ref) = reference_forward(tokens, hidden, top, params)
    np.testing.assert_allclose(np.asarray(decoded), np.asarray(dec_ref), rtol=1e-4, atol=2e-4)
    np.testing.assert_allclose(np.asarray(hN), np.asarray(h_ref), rtol=1e-4, atol=2e-4)
    np.testing.assert_allclose(np.asarray(cN), np.asarray(c_ref), rtol=1e-4, atol=2e-4)

    print("KERNEL_OK")
</pallas_src>

<mosaic_0001>
module attributes {stable_mosaic.version = 11 : i64} {
  func.func @_linear_kernel(%arg0: i32, %arg1: i32, %arg2: memref<64x256xf32, #tpu.memory_space<vmem>>, %arg3: memref<256x512xf32, #tpu.memory_space<vmem>>, %arg4: memref<1x512xf32, #tpu.memory_space<vmem>>, %arg5: memref<64x512xf32, #tpu.memory_space<vmem>>) attributes {dimension_semantics = [#tpu.dimension_semantics<parallel>, #tpu.dimension_semantics<parallel>], iteration_bounds = array<i64: 1, 1>, scalar_prefetch = 0 : i64, scratch_operands = 0 : i64, tpu.core_type = #tpu.core_type<tc>, window_params = [{transform_indices = @transform_0, window_bounds = array<i64: 64, 256>}, {transform_indices = @transform_1, window_bounds = array<i64: 256, 512>}, {transform_indices = @transform_2, window_bounds = array<i64: 1, 512>}, {transform_indices = @transform_3, window_bounds = array<i64: 64, 512>}]} {
    %c0 = arith.constant 0 : index
    %c0_0 = arith.constant 0 : index
    %0 = vector.load %arg2[%c0, %c0_0] : memref<64x256xf32, #tpu.memory_space<vmem>>, vector<64x256xf32>
    %c0_1 = arith.constant 0 : index
    %c0_2 = arith.constant 0 : index
    %1 = vector.load %arg3[%c0_1, %c0_2] : memref<256x512xf32, #tpu.memory_space<vmem>>, vector<256x512xf32>
    %cst = arith.constant dense<0.000000e+00> : vector<64x512xf32>
    %2 = tpu.matmul %0, %1, %cst {dimension_numbers = #tpu.dot_dimension_numbers<[1], [0], [0], [1], [0, 0, 1, 1], [], []>} : vector<64x256xf32>, vector<256x512xf32>, vector<64x512xf32> -> vector<64x512xf32>
    %c0_3 = arith.constant 0 : index
    %c0_4 = arith.constant 0 : index
    %3 = vector.load %arg4[%c0_3, %c0_4] : memref<1x512xf32, #tpu.memory_space<vmem>>, vector<1x512xf32>
    %4 = vector.broadcast %3 : vector<1x512xf32> to vector<64x512xf32>
    %5 = arith.addf %2, %4 : vector<64x512xf32>
    %c0_5 = arith.constant 0 : index
    %c0_6 = arith.constant 0 : index
    %6 = vector.load %arg5[%c0_5, %c0_6] : memref<64x512xf32, #tpu.memory_space<vmem>>, vector<64x512xf32>
    tpu.vector_store %arg5[%c0_5, %c0_6], %5 {strides = array<i32>} : memref<64x512xf32, #tpu.memory_space<vmem>>, vector<64x512xf32>,
    return
  }
  func.func @transform_0(%arg0: i32, %arg1: i32) -> (i32, i32) {
    %c0_i32 = arith.constant 0 : i32
    %c0_i32_0 = arith.constant 0 : i32
    return %arg0, %c0_i32 : i32, i32
  }
  func.func @transform_1(%arg0: i32, %arg1: i32) -> (i32, i32) {
    %c0_i32 = arith.constant 0 : i32
    %c0_i32_0 = arith.constant 0 : i32
    return %c0_i32, %arg1 : i32, i32
  }
  func.func @transform_2(%arg0: i32, %arg1: i32) -> (i32, i32) {
    %c0_i32 = arith.constant 0 : i32
    %c0_i32_0 = arith.constant 0 : i32
    return %c0_i32, %arg1 : i32, i32
  }
  func.func @transform_3(%arg0: i32, %arg1: i32) -> (i32, i32) {
    %c0_i32 = arith.constant 0 : i32
    return %arg0, %arg1 : i32, i32
  }
}

</mosaic_0001>

<bundles_post_ra>
// kernel: tpu_custom_call.1
= control target key start
LH: loop header
LB: loop body
LE: loop exit
PB: predicated region body
PF: predicated region fallthrough
CT: control target
= control target key end

     0   :  { %8 = vsyncpa [#allocation3], 0  ;;  %s676_s0 = inlined_call_operand.hbm [shape: f32[64,256], index: 0, kind: input, shape index: {}]   ;;  %s677_s1 = inlined_call_operand.hbm [shape: f32[256,512], index: 1, kind: input, shape index: {}]   ;;  %s678_s2 = inlined_call_operand.hbm [shape: f32[1,512], index: 2, kind: input, shape index: {}]   ;;  %s679_s3 = inlined_call_operand.hbm [shape: f32[64,512], index: 3, kind: output, shape index: {}]  }
   0x1   :  { %9 = vsyncpa [#allocation6], 0 }
   0x2   :  { %10 = vsyncpa [#allocation4], 0  ;;  %s590_s12 = smov [#allocation5]  }
   0x3   :  { %s28_s13 = sshll.u32 %s590_s12, 4  ;;  %s29_s13 = int_to_ptr.vmem [resolvable:$true] %s28_s13 }
   0x4   :  { %s512_s14 = scalar_lea.vmem %s29_s13, 16384  ;;  %p517_p1 = scmp.lt.s32.totalorder %s29_s13, %s29_s13 }
   0x5   :  { %p513_p0 = scmp.ne.s32.totalorder %s29_s13, %s512_s14  ;;  %p518_p2 = scmp.lt.s32.totalorder %s512_s14, %s512_s14 }
   0x7   :  { %p519_p3 = por %p518_p2, %p517_p1 }
   0x9   :  { %p520_p4 = pnand %p519_p3, %p513_p0 }
   0xb   :  { %523 = shalt.err (!%p520_p4)
}
   0xc   :  { %s591_s15 = smov 512   ;;  %s592_s16 = smov 32  }
   0xd   :  { %34 = dma.hbm_to_vmem [thread:$0]  %s677_s1, 16384, %s29_s13, [#allocation6], %s591_s15, %s591_s15, %s592_s16  }
   0xe   :  { %s593_s19 = smov [#allocation2]  }
   0xf   :  { %s16_s20 = sshll.u32 %s593_s19, 4  ;;  %s17_s20 = int_to_ptr.vmem [resolvable:$true] %s16_s20 }
  0x10   :  { %s532_s21 = scalar_lea.vmem %s17_s20, 2048  ;;  %p537_p6 = scmp.lt.s32.totalorder %s17_s20, %s17_s20 }
  0x11   :  { %p533_p5 = scmp.ne.s32.totalorder %s17_s20, %s532_s21  ;;  %p538_p7 = scmp.lt.s32.totalorder %s532_s21, %s532_s21 }
  0x13   :  { %p539_p8 = por %p538_p7, %p537_p6 }
  0x15   :  { %p540_p9 = pnand %p539_p8, %p533_p5 }
  0x17   :  { %543 = shalt.err (!%p540_p9)
}
  0x18   :  { %s594_s22 = smov 256   ;;  %s595_s23 = smov 16  }
  0x19   :  { %22 = dma.hbm_to_vmem [thread:$0]  %s676_s0, 2048, %s17_s20, [#allocation3], %s594_s22, %s594_s22, %s595_s23  }
  0x1a   :  { %s596_s26 = smov [#allocation7]  }
  0x1b   :  { %s41_s27 = sshll.u32 %s596_s26, 4  ;;  %s42_s27 = int_to_ptr.vmem [resolvable:$true] %s41_s27 }
  0x1c   :  { %s552_s1 = scalar_lea.vmem %s42_s27, 64  ;;  %p557_p11 = scmp.lt.s32.totalorder %s42_s27, %s42_s27 }
  0x1d   :  { %p553_p10 = scmp.ne.s32.totalorder %s42_s27, %s552_s1  ;;  %p558_p12 = scmp.lt.s32.totalorder %s552_s1, %s552_s1 }
  0x1f   :  { %p559_p13 = por %p558_p12, %p557_p11 }
  0x21   :  { %p560_p0 = pnand %p559_p13, %p553_p10 }
  0x23   :  { %563 = shalt.err (!%p560_p0)
}
  0x24   :  { %44 = dma.hbm_to_vmem [thread:$0]  %s678_s2, 64, %s42_s27, [#allocation6]  }
  0x25   :  { %584 = dma.done.wait [#allocation3], 2048  }
  0x26   :  { %585 = vsyncadd [#allocation3], 4294965248 }
  0x27   :  { %586 = dma.done.wait [#allocation6], 16448  }
  0x28   :  { %587 = vsyncadd [#allocation6], 4294950848  ;;  %v131_v0 = vld [vmem:[#allocation5 + $0x1e8] sm:$0xff]  ;;  %v133_v1 = vld [vmem:[#allocation5 + $0x1f8] sm:$0xff]  ;;  %s597_s0 = smov [#allocation8]  }
  0x29   :  { %v130_v2 = vld [vmem:[#allocation5 + $0x1e0] sm:$0xff]  ;;  %220 = vmatprep.subr.mxu0 %v131_v0  ;;  %333 = vmatprep.subr.mxu1 %v133_v1  ;;  %v132_v3 = vld [vmem:[#allocation5 + $0x1f0] sm:$0xff]  ;;  %v127_v4 = vld [vmem:[#allocation5 + $0x1c8] sm:$0xff]  ;;  %s483_s2 = sshll.u32 %s597_s0, 4  ;;  %s484_s2 = int_to_ptr.vmem [resolvable:$true] %s483_s2 }
  0x2a   :  { %v129_v5 = vld [vmem:[#allocation5 + $0x1d8] sm:$0xff]  ;;  %221 = vmatpush1.msra.mxu0 %v130_v2  ;;  %334 = vmatpush1.msra.mxu1 %v132_v3  ;;  %v126_v6 = vld [vmem:[#allocation5 + $0x1c0] sm:$0xff]  ;;  %v128_v7 = vld [vmem:[#allocation5 + $0x1d0] sm:$0xff]  ;;  %s564_s30 = scalar_lea.vmem %s484_s2, 4096  ;;  %p569_p2 = scmp.lt.s32.totalorder %s484_s2, %s484_s2 }
  0x2b   :  { %v123_v8 = vld [vmem:[#allocation5 + $0x1a8] sm:$0xff]  ;;  %222 = vmatprep.subr.mxu0 %v127_v4  ;;  %335 = vmatprep.subr.mxu1 %v129_v5  ;;  %v125_v9 = vld [vmem:[#allocation5 + $0x1b8] sm:$0xff]  ;;  %v122_v10 = vld [vmem:[#allocation5 + $0x1a0] sm:$0xff]  ;;  %p565_p1 = scmp.ne.s32.totalorder %s484_s2, %s564_s30  ;;  %p570_p3 = scmp.lt.s32.totalorder %s564_s30, %s564_s30 }
  0x2c   :  { %v124_v11 = vld [vmem:[#allocation5 + $0x1b0] sm:$0xff]  ;;  %223 = vmatpush1.msra.mxu0 %v126_v6  ;;  %336 = vmatpush1.msra.mxu1 %v128_v7  ;;  %v119_v12 = vld [vmem:[#allocation5 + $0x188] sm:$0xff]  ;;  %v121_v13 = vld [vmem:[#allocation5 + $0x198] sm:$0xff] }
  0x2d   :  { %224 = vmatprep.subr.mxu0 %v123_v8  ;;  %337 = vmatprep.subr.mxu1 %v125_v9  ;;  %v118_v14 = vld [vmem:[#allocation5 + $0x180] sm:$0xff]  ;;  %v120_v15 = vld [vmem:[#allocation5 + $0x190] sm:$0xff]  ;;  %v115_v16 = vld [vmem:[#allocation5 + $0x168] sm:$0xff]  ;;  %p571_p4 = por %p570_p3, %p569_p2 }
  0x2e   :  { %225 = vmatpush1.msra.mxu0 %v122_v10  ;;  %338 = vmatpush1.msra.mxu1 %v124_v11  ;;  %v117_v17 = vld [vmem:[#allocation5 + $0x178] sm:$0xff]  ;;  %v114_v18 = vld [vmem:[#allocation5 + $0x160] sm:$0xff]  ;;  %v116_v19 = vld [vmem:[#allocation5 + $0x170] sm:$0xff] }
  0x2f   :  { %226 = vmatprep.subr.mxu0 %v119_v12  ;;  %339 = vmatprep.subr.mxu1 %v121_v13  ;;  %v111_v20 = vld [vmem:[#allocation5 + $0x148] sm:$0xff]  ;;  %v113_v21 = vld [vmem:[#allocation5 + $0x158] sm:$0xff]  ;;  %v110_v22 = vld [vmem:[#allocation5 + $0x140] sm:$0xff]  ;;  %p572_p5 = pnand %p571_p4, %p565_p1 }
  0x30   :  { %227 = vmatpush1.msra.mxu0 %v118_v14  ;;  %340 = vmatpush1.msra.mxu1 %v120_v15  ;;  %v112_v23 = vld [vmem:[#allocation5 + $0x150] sm:$0xff]  ;;  %v107_v24 = vld [vmem:[#allocation5 + $0x128] sm:$0xff]  ;;  %v109_v25 = vld [vmem:[#allocation5 + $0x138] sm:$0xff] }
  0x31   :  { %228 = vmatprep.subr.mxu0 %v115_v16  ;;  %341 = vmatprep.subr.mxu1 %v117_v17  ;;  %v106_v26 = vld [vmem:[#allocation5 + $0x120] sm:$0xff]  ;;  %v108_v27 = vld [vmem:[#allocation5 + $0x130] sm:$0xff]  ;;  %v103_v28 = vld [vmem:[#allocation5 + $0x108] sm:$0xff] }
  0x32   :  { %229 = vmatpush1.msra.mxu0 %v114_v18  ;;  %342 = vmatpush1.msra.mxu1 %v116_v19  ;;  %v105_v29 = vld [vmem:[#allocation5 + $0x118] sm:$0xff]  ;;  %v102_v30 = vld [vmem:[#allocation5 + $0x100] sm:$0xff]  ;;  %v104_v31 = vld [vmem:[#allocation5 + $0x110] sm:$0xff] }
  0x33   :  { %230 = vmatprep.subr.mxu0 %v111_v20  ;;  %343 = vmatprep.subr.mxu1 %v113_v21  ;;  %v99_v32 = vld [vmem:[#allocation5 + $0xe8] sm:$0xff]  ;;  %v101_v33 = vld [vmem:[#allocation5 + $0xf8] sm:$0xff]  ;;  %v98_v34 = vld [vmem:[#allocation5 + $0xe0] sm:$0xff] }
  0x34   :  { %231 = vmatpush1.msra.mxu0 %v110_v22  ;;  %344 = vmatpush1.msra.mxu1 %v112_v23  ;;  %v100_v35 = vld [vmem:[#allocation5 + $0xf0] sm:$0xff]  ;;  %v95_v36 = vld [vmem:[#allocation5 + $0xc8] sm:$0xff]  ;;  %v97_v37 = vld [vmem:[#allocation5 + $0xd8] sm:$0xff] }
  0x35   :  { %232 = vmatprep.subr.mxu0 %v107_v24  ;;  %345 = vmatprep.subr.mxu1 %v109_v25  ;;  %v94_v38 = vld [vmem:[#allocation5 + $0xc0] sm:$0xff]  ;;  %v96_v39 = vld [vmem:[#allocation5 + $0xd0] sm:$0xff]  ;;  %v91_v40 = vld [vmem:[#allocation5 + $0xa8] sm:$0xff] }
  0x36   :  { %233 = vmatpush1.msra.mxu0 %v106_v26  ;;  %346 = vmatpush1.msra.mxu1 %v108_v27  ;;  %v93_v41 = vld [vmem:[#allocation5 + $0xb8] sm:$0xff]  ;;  %v90_v42 = vld [vmem:[#allocation5 + $0xa0] sm:$0xff]  ;;  %v92_v43 = vld [vmem:[#allocation5 + $0xb0] sm:$0xff] }
  0x37   :  { %234 = vmatprep.subr.mxu0 %v103_v28  ;;  %347 = vmatprep.subr.mxu1 %v105_v29  ;;  %v87_v44 = vld [vmem:[#allocation5 + $0x88] sm:$0xff]  ;;  %v89_v45 = vld [vmem:[#allocation5 + $0x98] sm:$0xff]  ;;  %v86_v46 = vld [vmem:[#allocation5 + $0x80] sm:$0xff] }
  0x38   :  { %235 = vmatpush1.msra.mxu0 %v102_v30  ;;  %348 = vmatpush1.msra.mxu1 %v104_v31  ;;  %v88_v47 = vld [vmem:[#allocation5 + $0x90] sm:$0xff]  ;;  %v83_v48 = vld [vmem:[#allocation5 + $0x68] sm:$0xff]  ;;  %v85_v49 = vld [vmem:[#allocation5 + $0x78] sm:$0xff] }
  0x39   :  { %236 = vmatprep.subr.mxu0 %v99_v32  ;;  %349 = vmatprep.subr.mxu1 %v101_v33  ;;  %v82_v50 = vld [vmem:[#allocation5 + $0x60] sm:$0xff]  ;;  %v84_v51 = vld [vmem:[#allocation5 + $0x70] sm:$0xff]  ;;  %v79_v52 = vld [vmem:[#allocation5 + $0x48] sm:$0xff] }
  0x3a   :  { %237 = vmatpush1.msra.mxu0 %v98_v34  ;;  %350 = vmatpush1.msra.mxu1 %v100_v35  ;;  %v81_v53 = vld [vmem:[#allocation5 + $0x58] sm:$0xff]  ;;  %v78_v54 = vld [vmem:[#allocation5 + $0x40] sm:$0xff]  ;;  %v80_v55 = vld [vmem:[#allocation5 + $0x50] sm:$0xff] }
  0x3b   :  { %238 = vmatprep.subr.mxu0 %v95_v36  ;;  %351 = vmatprep.subr.mxu1 %v97_v37  ;;  %v75_v56 = vld [vmem:[#allocation5 + $0x28] sm:$0xff]  ;;  %v77_v57 = vld [vmem:[#allocation5 + $0x38] sm:$0xff]  ;;  %v74_v58 = vld [vmem:[#allocation5 + $0x20] sm:$0xff] }
  0x3c   :  { %239 = vmatpush1.msra.mxu0 %v94_v38  ;;  %352 = vmatpush1.msra.mxu1 %v96_v39  ;;  %v76_v59 = vld [vmem:[#allocation5 + $0x30] sm:$0xff]  ;;  %v71_v60 = vld [vmem:[#allocation5 + $0x8] sm:$0xff]  ;;  %v73_v61 = vld [vmem:[#allocation5 + $0x18] sm:$0xff] }
  0x3d   :  { %240 = vmatprep.subr.mxu0 %v91_v40  ;;  %353 = vmatprep.subr.mxu1 %v93_v41  ;;  %v70_v62 = vld [vmem:[#allocation5] sm:$0xff]  ;;  %v72_v63 = vld [vmem:[#allocation5 + $0x10] sm:$0xff]  ;;  %v195_v0 = vld [vmem:[#allocation5 + $0x3e8] sm:$0xff] }
  0x3e   :  { %241 = vmatpush1.msra.mxu0 %v90_v42  ;;  %354 = vmatpush1.msra.mxu1 %v92_v43  ;;  %v197_v1 = vld [vmem:[#allocation5 + $0x3f8] sm:$0xff]  ;;  %v194_v2 = vld [vmem:[#allocation5 + $0x3e0] sm:$0xff]  ;;  %v196_v3 = vld [vmem:[#allocation5 + $0x3f0] sm:$0xff] }
  0x3f   :  { %242 = vmatprep.subr.mxu0 %v87_v44  ;;  %355 = vmatprep.subr.mxu1 %v89_v45  ;;  %v191_v4 = vld [vmem:[#allocation5 + $0x3c8] sm:$0xff]  ;;  %v193_v5 = vld [vmem:[#allocation5 + $0x3d8] sm:$0xff]  ;;  %v190_v6 = vld [vmem:[#allocation5 + $0x3c0] sm:$0xff] }
  0x40   :  { %243 = vmatpush1.msra.mxu0 %v86_v46  ;;  %356 = vmatpush1.msra.mxu1 %v88_v47  ;;  %v192_v7 = vld [vmem:[#allocation5 + $0x3d0] sm:$0xff]  ;;  %v187_v8 = vld [vmem:[#allocation5 + $0x3a8] sm:$0xff]  ;;  %v189_v9 = vld [vmem:[#allocation5 + $0x3b8] sm:$0xff] }
  0x41   :  { %244 = vmatprep.subr.mxu0 %v83_v48  ;;  %357 = vmatprep.subr.mxu1 %v85_v49  ;;  %v186_v10 = vld [vmem:[#allocation5 + $0x3a0] sm:$0xff]  ;;  %v188_v11 = vld [vmem:[#allocation5 + $0x3b0] sm:$0xff]  ;;  %v183_v12 = vld [vmem:[#allocation5 + $0x388] sm:$0xff] }
  0x42   :  { %245 = vmatpush1.msra.mxu0 %v82_v50  ;;  %358 = vmatpush1.msra.mxu1 %v84_v51  ;;  %v185_v13 = vld [vmem:[#allocation5 + $0x398] sm:$0xff]  ;;  %v182_v14 = vld [vmem:[#allocation5 + $0x380] sm:$0xff]  ;;  %v184_v15 = vld [vmem:[#allocation5 + $0x390] sm:$0xff] }
  0x43   :  { %246 = vmatprep.subr.mxu0 %v79_v52  ;;  %359 = vmatprep.subr.mxu1 %v81_v53  ;;  %v179_v16 = vld [vmem:[#allocation5 + $0x368] sm:$0xff]  ;;  %v181_v17 = vld [vmem:[#allocation5 + $0x378] sm:$0xff]  ;;  %v178_v18 = vld [vmem:[#allocation5 + $0x360] sm:$0xff] }
  0x44   :  { %247 = vmatpush1.msra.mxu0 %v78_v54  ;;  %360 = vmatpush1.msra.mxu1 %v80_v55  ;;  %v180_v19 = vld [vmem:[#allocation5 + $0x370] sm:$0xff]  ;;  %v175_v20 = vld [vmem:[#allocation5 + $0x348] sm:$0xff]  ;;  %v177_v21 = vld [vmem:[#allocation5 + $0x358] sm:$0xff] }
  0x45   :  { %248 = vmatprep.subr.mxu0 %v75_v56  ;;  %361 = vmatprep.subr.mxu1 %v77_v57  ;;  %v174_v22 = vld [vmem:[#allocation5 + $0x340] sm:$0xff]  ;;  %v176_v23 = vld [vmem:[#allocation5 + $0x350] sm:$0xff]  ;;  %v171_v24 = vld [vmem:[#allocation5 + $0x328] sm:$0xff] }
  0x46   :  { %249 = vmatpush1.msra.mxu0 %v74_v58  ;;  %362 = vmatpush1.msra.mxu1 %v76_v59  ;;  %v173_v25 = vld [vmem:[#allocation5 + $0x338] sm:$0xff]  ;;  %v170_v26 = vld [vmem:[#allocation5 + $0x320] sm:$0xff]  ;;  %v172_v27 = vld [vmem:[#allocation5 + $0x330] sm:$0xff] }
  0x47   :  { %250 = vmatprep.subr.mxu0 %v71_v60  ;;  %363 = vmatprep.subr.mxu1 %v73_v61  ;;  %v167_v28 = vld [vmem:[#allocation5 + $0x308] sm:$0xff]  ;;  %v169_v29 = vld [vmem:[#allocation5 + $0x318] sm:$0xff]  ;;  %v166_v30 = vld [vmem:[#allocation5 + $0x300] sm:$0xff] }
  0x48   :  { %251 = vmatpush1.msra.mxu0 %v70_v62  ;;  %364 = vmatpush1.msra.mxu1 %v72_v63  ;;  %v168_v31 = vld [vmem:[#allocation5 + $0x310] sm:$0xff]  ;;  %v163_v32 = vld [vmem:[#allocation5 + $0x2e8] sm:$0xff]  ;;  %v165_v33 = vld [vmem:[#allocation5 + $0x2f8] sm:$0xff] }
  0x49   :  { %252 = vmatprep.subr.mxu0 %v195_v0  ;;  %365 = vmatprep.subr.mxu1 %v197_v1  ;;  %v162_v34 = vld [vmem:[#allocation5 + $0x2e0] sm:$0xff]  ;;  %v164_v35 = vld [vmem:[#allocation5 + $0x2f0] sm:$0xff]  ;;  %v159_v36 = vld [vmem:[#allocation5 + $0x2c8] sm:$0xff] }
  0x4a   :  { %253 = vmatpush2.msra.mxu0 %v194_v2  ;;  %366 = vmatpush2.msra.mxu1 %v196_v3  ;;  %v161_v37 = vld [vmem:[#allocation5 + $0x2d8] sm:$0xff]  ;;  %v158_v38 = vld [vmem:[#allocation5 + $0x2c0] sm:$0xff]  ;;  %v160_v39 = vld [vmem:[#allocation5 + $0x2d0] sm:$0xff] }
  0x4b   :  { %254 = vmatprep.subr.mxu0 %v191_v4  ;;  %367 = vmatprep.subr.mxu1 %v193_v5  ;;  %v155_v40 = vld [vmem:[#allocation5 + $0x2a8] sm:$0xff]  ;;  %v157_v41 = vld [vmem:[#allocation5 + $0x2b8] sm:$0xff]  ;;  %v154_v42 = vld [vmem:[#allocation5 + $0x2a0] sm:$0xff] }
  0x4c   :  { %255 = vmatpush2.msra.mxu0 %v190_v6  ;;  %368 = vmatpush2.msra.mxu1 %v192_v7  ;;  %v156_v43 = vld [vmem:[#allocation5 + $0x2b0] sm:$0xff]  ;;  %v151_v44 = vld [vmem:[#allocation5 + $0x288] sm:$0xff]  ;;  %v153_v45 = vld [vmem:[#allocation5 + $0x298] sm:$0xff] }
  0x4d   :  { %256 = vmatprep.subr.mxu0 %v187_v8  ;;  %369 = vmatprep.subr.mxu1 %v189_v9  ;;  %v150_v46 = vld [vmem:[#allocation5 + $0x280] sm:$0xff]  ;;  %v152_v47 = vld [vmem:[#allocation5 + $0x290] sm:$0xff]  ;;  %v147_v48 = vld [vmem:[#allocation5 + $0x268] sm:$0xff] }
  0x4e   :  { %257 = vmatpush2.msra.mxu0 %v186_v10  ;;  %370 = vmatpush2.msra.mxu1 %v188_v11  ;;  %v149_v49 = vld [vmem:[#allocation5 + $0x278] sm:$0xff]  ;;  %v146_v50 = vld [vmem:[#allocation5 + $0x260] sm:$0xff]  ;;  %v148_v51 = vld [vmem:[#allocation5 + $0x270] sm:$0xff] }
  0x4f   :  { %258 = vmatprep.subr.mxu0 %v183_v12  ;;  %371 = vmatprep.subr.mxu1 %v185_v13  ;;  %v143_v52 = vld [vmem:[#allocation5 + $0x248] sm:$0xff]  ;;  %v145_v53 = vld [vmem:[#allocation5 + $0x258] sm:$0xff]  ;;  %v142_v54 = vld [vmem:[#allocation5 + $0x240] sm:$0xff] }
  0x50   :  { %259 = vmatpush2.msra.mxu0 %v182_v14  ;;  %372 = vmatpush2.msra.mxu1 %v184_v15  ;;  %v144_v55 = vld [vmem:[#allocation5 + $0x250] sm:$0xff]  ;;  %v139_v56 = vld [vmem:[#allocation5 + $0x228] sm:$0xff]  ;;  %v141_v57 = vld [vmem:[#allocation5 + $0x238] sm:$0xff] }
  0x51   :  { %260 = vmatprep.subr.mxu0 %v179_v16  ;;  %373 = vmatprep.subr.mxu1 %v181_v17  ;;  %v138_v58 = vld [vmem:[#allocation5 + $0x220] sm:$0xff]  ;;  %v140_v59 = vld [vmem:[#allocation5 + $0x230] sm:$0xff]  ;;  %v135_v60 = vld [vmem:[#allocation5 + $0x208] sm:$0xff]  ;;  %v200_v16 = vlaneseq }
  0x52   :  { %261 = vmatpush2.msra.mxu0 %v178_v18  ;;  %374 = vmatpush2.msra.mxu1 %v180_v19  ;;  %v137_v61 = vld [vmem:[#allocation5 + $0x218] sm:$0xff]  ;;  %v134_v62 = vld [vmem:[#allocation5 + $0x200] sm:$0xff]  ;;  %v55_v63 = vld [vmem:[#allocation2 + $0x8] sm:$0xff] }
  0x53   :  { %262 = vmatprep.subr.mxu0 %v175_v20  ;;  %375 = vmatprep.subr.mxu1 %v177_v21  ;;  %v136_v0 = vld [vmem:[#allocation5 + $0x210] sm:$0xff]  ;;  %v54_v1 = vld [vmem:[#allocation2] sm:$0xff]  ;;  %v57_v2 = vld [vmem:[#allocation2 + $0x18] sm:$0xff]  ;;  %v201_v17 = vshrl.u32 %v200_v16, 7 }
  0x54   :  { %263 = vmatpush2.msra.mxu0 %v174_v22  ;;  %376 = vmatpush2.msra.mxu1 %v176_v23  ;;  %v56_v3 = vld [vmem:[#allocation2 + $0x10] sm:$0xff]  ;;  %v59_v4 = vld [vmem:[#allocation2 + $0x28] sm:$0xff]  ;;  %v58_v5 = vld [vmem:[#allocation2 + $0x20] sm:$0xff] }
  0x55   :  { %264 = vmatprep.subr.mxu0 %v171_v24  ;;  %377 = vmatprep.subr.mxu1 %v173_v25  ;;  %v61_v6 = vld [vmem:[#allocation2 + $0x38] sm:$0xff]  ;;  %v60_v7 = vld [vmem:[#allocation2 + $0x30] sm:$0xff]  ;;  %v63_v8 = vld [vmem:[#allocation2 + $0x48] sm:$0xff]  ;;  %v202_v18 = vsub.s32 0, %v201_v17  ;;  %v210_v19 = vsub.s32 2, %v201_v17  ;;  %v206_v21 = vsub.s32 1, %v201_v17 }
  0x56   :  { %265 = vmatpush2.msra.mxu0 %v170_v26  ;;  %378 = vmatpush2.msra.mxu1 %v172_v27  ;;  %v62_v9 = vld [vmem:[#allocation2 + $0x40] sm:$0xff]  ;;  %v65_v10 = vld [vmem:[#allocation2 + $0x58] sm:$0xff]  ;;  %v64_v11 = vld [vmem:[#allocation2 + $0x50] sm:$0xff]  ;;  %v214_v22 = vsub.s32 3, %v201_v17 }
  0x57   :  { %266 = vmatprep.subr.mxu0 %v167_v28  ;;  %379 = vmatprep.subr.mxu1 %v169_v29  ;;  %v67_v12 = vld [vmem:[#allocation2 + $0x68] sm:$0xff]  ;;  %v66_v13 = vld [vmem:[#allocation2 + $0x60] sm:$0xff]  ;;  %v69_v14 = vld [vmem:[#allocation2 + $0x78] sm:$0xff] }
  0x58   :  { %267 = vmatpush2.msra.mxu0 %v166_v30  ;;  %380 = vmatpush2.msra.mxu1 %v168_v31  ;;  %v68_v15 = vld [vmem:[#allocation2 + $0x70] sm:$0xff]  ;;  %v198_v20 = vld [vmem:[#allocation7] sm:$0xf] }
  0x59   :  { %268 = vmatprep.subr.mxu0 %v163_v32  ;;  %381 = vmatprep.subr.mxu1 %v165_v33  ;;  %v630_v23 = vrot.slane %v198_v20, %v202_v18  ;;  %v632_v24 = vrot.slane %v198_v20, %v210_v19  ;;  %v634_v25 = vrot.slane %v198_v20, %v206_v21 }
  0x5a   :  { %269 = vmatpush2.msra.mxu0 %v162_v34  ;;  %382 = vmatpush2.msra.mxu1 %v164_v35  ;;  %v636_v26 = vrot.slane %v198_v20, %v214_v22 }
  0x5b   :  { %270 = vmatprep.subr.mxu0 %v159_v36  ;;  %383 = vmatprep.subr.mxu1 %v161_v37 }
  0x5c   :  { %271 = vmatpush2.msra.mxu0 %v158_v38  ;;  %384 = vmatpush2.msra.mxu1 %v160_v39 }
  0x5d   :  { %272 = vmatprep.subr.mxu0 %v155_v40  ;;  %385 = vmatprep.subr.mxu1 %v157_v41 }
  0x5e   :  { %273 = vmatpush2.msra.mxu0 %v154_v42  ;;  %386 = vmatpush2.msra.mxu1 %v156_v43 }
  0x5f   :  { %274 = vmatprep.subr.mxu0 %v151_v44  ;;  %387 = vmatprep.subr.mxu1 %v153_v45 }
  0x60   :  { %275 = vmatpush2.msra.mxu0 %v150_v46  ;;  %388 = vmatpush2.msra.mxu1 %v152_v47 }
  0x61   :  { %276 = vmatprep.subr.mxu0 %v147_v48  ;;  %389 = vmatprep.subr.mxu1 %v149_v49 }
  0x62   :  { %277 = vmatpush2.msra.mxu0 %v146_v50  ;;  %390 = vmatpush2.msra.mxu1 %v148_v51 }
  0x63   :  { %278 = vmatprep.subr.mxu0 %v143_v52  ;;  %391 = vmatprep.subr.mxu1 %v145_v53 }
  0x64   :  { %279 = vmatpush2.msra.mxu0 %v142_v54  ;;  %392 = vmatpush2.msra.mxu1 %v144_v55 }
  0x65   :  { %280 = vmatprep.subr.mxu0 %v139_v56  ;;  %393 = vmatprep.subr.mxu1 %v141_v57 }
  0x66   :  { %281 = vmatpush2.msra.mxu0 %v138_v58  ;;  %394 = vmatpush2.msra.mxu1 %v140_v59 }
  0x67   :  { %282 = vmatprep.subr.mxu0 %v135_v60  ;;  %395 = vmatprep.subr.mxu1 %v137_v61 }
  0x68   :  { %283 = vmatpush2.msra.mxu0 %v134_v62  ;;  %284 = vmatprep.mubr.f32.mxu0 %v55_v63 }
  0x69   :  { %396 = vmatpush2.msra.mxu1 %v136_v0  ;;  %397 = vmatprep.mubr.f32.mxu1 %v55_v63 }
  0x6a   :  { %285 = vmatmul.mubr.f32.vlgmr.msra.gmra.mxu0 %v54_v1  ;;  %398 = vmatmul.mubr.f32.vlgmr.msra.gmra.mxu1 %v54_v1 }
  0x6b   :  { %290 = vmatprep.mubr.f32.mxu0 %v57_v2  ;;  %403 = vmatprep.mubr.f32.mxu1 %v57_v2 }
  0x6e   :  { %291 = vmatmul.mubr.f32.gmra.mxu0 %v56_v3  ;;  %404 = vmatmul.mubr.f32.gmra.mxu1 %v56_v3 }
  0x6f   :  { %296 = vmatprep.mubr.f32.mxu0 %v59_v4  ;;  %409 = vmatprep.mubr.f32.mxu1 %v59_v4 }
  0x72   :  { %297 = vmatmul.mubr.f32.gmra.mxu0 %v58_v5  ;;  %410 = vmatmul.mubr.f32.gmra.mxu1 %v58_v5 }
  0x73   :  { %302 = vmatprep.mubr.f32.mxu0 %v61_v6  ;;  %415 = vmatprep.mubr.f32.mxu1 %v61_v6 }
  0x76   :  { %303 = vmatmul.mubr.f32.gmra.mxu0 %v60_v7  ;;  %416 = vmatmul.mubr.f32.gmra.mxu1 %v60_v7 }
  0x77   :  { %308 = vmatprep.mubr.f32.mxu0 %v63_v8  ;;  %421 = vmatprep.mubr.f32.mxu1 %v63_v8 }
  0x7a   :  { %309 = vmatmul.mubr.f32.gmra.mxu0 %v62_v9  ;;  %422 = vmatmul.mubr.f32.gmra.mxu1 %v62_v9 }
  0x7b   :  { %314 = vmatprep.mubr.f32.mxu0 %v65_v10  ;;  %427 = vmatprep.mubr.f32.mxu1 %v65_v10 }
  0x7e   :  { %315 = vmatmul.mubr.f32.gmra.mxu0 %v64_v11  ;;  %428 = vmatmul.mubr.f32.gmra.mxu1 %v64_v11 }
  0x7f   :  { %320 = vmatprep.mubr.f32.mxu0 %v67_v12  ;;  %433 = vmatprep.mubr.f32.mxu1 %v67_v12 }
  0x82   :  { %321 = vmatmul.mubr.f32.gmra.mxu0 %v66_v13  ;;  %434 = vmatmul.mubr.f32.gmra.mxu1 %v66_v13 }
  0x83   :  { %326 = vmatprep.mubr.f32.mxu0 %v69_v14  ;;  %439 = vmatprep.mubr.f32.mxu1 %v69_v14 }
  0x86   :  { %327 = vmatmul.mubr.f32.gmra.mxu0 %v68_v15  ;;  %440 = vmatmul.mubr.f32.gmra.mxu1 %v68_v15 }
 0x12a   :  { %v286_v27 = vpop.f32.mrf.mxu0  ;;  %v399_v28 = vpop.f32.mrf.mxu1 }
 0x12b   :  { %v287_v29 = vadd.f32 %v286_v27, %v630_v23  ;;  %v400_v30 = vadd.f32 %v399_v28, %v632_v24 }
 0x12c   :  { %v288_v31 = vpop.f32.mrf.mxu0  ;;  %v401_v32 = vpop.f32.mrf.mxu1 }
 0x12d   :  { %446 = vst [vmem:[#allocation8] sm:$0xff] %v287_v29  ;;  %448 = vst [vmem:[#allocation8 + $0x10] sm:$0xff] %v400_v30  ;;  %v289_v33 = vadd.f32 %v288_v31, %v634_v25  ;;  %v402_v34 = vadd.f32 %v401_v32, %v636_v26 }
 0x12e   :  { %v292_v35 = vpop.f32.mrf.mxu0  ;;  %v405_v36 = vpop.f32.mrf.mxu1 }
 0x12f   :  { %447 = vst [vmem:[#allocation8 + $0x8] sm:$0xff] %v289_v33  ;;  %449 = vst [vmem:[#allocation8 + $0x18] sm:$0xff] %v402_v34  ;;  %v293_v37 = vadd.f32 %v292_v35, %v630_v23  ;;  %v406_v38 = vadd.f32 %v405_v36, %v632_v24 }
 0x130   :  { %v294_v39 = vpop.f32.mrf.mxu0  ;;  %v407_v40 = vpop.f32.mrf.mxu1 }
 0x131   :  { %450 = vst [vmem:[#allocation8 + $0x20] sm:$0xff] %v293_v37  ;;  %452 = vst [vmem:[#allocation8 + $0x30] sm:$0xff] %v406_v38  ;;  %v295_v41 = vadd.f32 %v294_v39, %v634_v25  ;;  %v408_v42 = vadd.f32 %v407_v40, %v636_v26 }
 0x132   :  { %v298_v43 = vpop.f32.mrf.mxu0  ;;  %v411_v44 = vpop.f32.mrf.mxu1 }
 0x133   :  { %451 = vst [vmem:[#allocation8 + $0x28] sm:$0xff] %v295_v41  ;;  %453 = vst [vmem:[#allocation8 + $0x38] sm:$0xff] %v408_v42  ;;  %v299_v45 = vadd.f32 %v298_v43, %v630_v23  ;;  %v412_v46 = vadd.f32 %v411_v44, %v632_v24 }
 0x134   :  { %v300_v47 = vpop.f32.mrf.mxu0  ;;  %v413_v48 = vpop.f32.mrf.mxu1 }
 0x135   :  { %454 = vst [vmem:[#allocation8 + $0x40] sm:$0xff] %v299_v45  ;;  %456 = vst [vmem:[#allocation8 + $0x50] sm:$0xff] %v412_v46  ;;  %v301_v49 = vadd.f32 %v300_v47, %v634_v25  ;;  %v414_v50 = vadd.f32 %v413_v48, %v636_v26 }
 0x136   :  { %v304_v51 = vpop.f32.mrf.mxu0  ;;  %v417_v52 = vpop.f32.mrf.mxu1 }
 0x137   :  { %455 = vst [vmem:[#allocation8 + $0x48] sm:$0xff] %v301_v49  ;;  %457 = vst [vmem:[#allocation8 + $0x58] sm:$0xff] %v414_v50  ;;  %v305_v53 = vadd.f32 %v304_v51, %v630_v23  ;;  %v418_v54 = vadd.f32 %v417_v52, %v632_v24 }
 0x138   :  { %v306_v55 = vpop.f32.mrf.mxu0  ;;  %v419_v56 = vpop.f32.mrf.mxu1 }
 0x139   :  { %458 = vst [vmem:[#allocation8 + $0x60] sm:$0xff] %v305_v53  ;;  %460 = vst [vmem:[#allocation8 + $0x70] sm:$0xff] %v418_v54  ;;  %v307_v57 = vadd.f32 %v306_v55, %v634_v25  ;;  %v420_v58 = vadd.f32 %v419_v56, %v636_v26 }
 0x13a   :  { %v310_v59 = vpop.f32.mrf.mxu0  ;;  %v423_v60 = vpop.f32.mrf.mxu1 }
 0x13b   :  { %459 = vst [vmem:[#allocation8 + $0x68] sm:$0xff] %v307_v57  ;;  %461 = vst [vmem:[#allocation8 + $0x78] sm:$0xff] %v420_v58  ;;  %v311_v61 = vadd.f32 %v310_v59, %v630_v23  ;;  %v424_v62 = vadd.f32 %v423_v60, %v632_v24 }
 0x13c   :  { %v312_v63 = vpop.f32.mrf.mxu0  ;;  %v425_v0 = vpop.f32.mrf.mxu1 }
 0x13d   :  { %462 = vst [vmem:[#allocation8 + $0x80] sm:$0xff] %v311_v61  ;;  %464 = vst [vmem:[#allocation8 + $0x90] sm:$0xff] %v424_v62  ;;  %v313_v1 = vadd.f32 %v312_v63, %v634_v25  ;;  %v426_v2 = vadd.f32 %v425_v0, %v636_v26 }
 0x13e   :  { %v316_v3 = vpop.f32.mrf.mxu0  ;;  %v429_v4 = vpop.f32.mrf.mxu1 }
 0x13f   :  { %463 = vst [vmem:[#allocation8 + $0x88] sm:$0xff] %v313_v1  ;;  %465 = vst [vmem:[#allocation8 + $0x98] sm:$0xff] %v426_v2  ;;  %v317_v5 = vadd.f32 %v316_v3, %v630_v23  ;;  %v430_v6 = vadd.f32 %v429_v4, %v632_v24 }
 0x140   :  { %v318_v7 = vpop.f32.mrf.mxu0  ;;  %v431_v8 = vpop.f32.mrf.mxu1 }
 0x141   :  { %466 = vst [vmem:[#allocation8 + $0xa0] sm:$0xff] %v317_v5  ;;  %468 = vst [vmem:[#allocation8 + $0xb0] sm:$0xff] %v430_v6  ;;  %v319_v9 = vadd.f32 %v318_v7, %v634_v25  ;;  %v432_v10 = vadd.f32 %v431_v8, %v636_v26 }
 0x142   :  { %v322_v11 = vpop.f32.mrf.mxu0  ;;  %v435_v12 = vpop.f32.mrf.mxu1 }
 0x143   :  { %467 = vst [vmem:[#allocation8 + $0xa8] sm:$0xff] %v319_v9  ;;  %469 = vst [vmem:[#allocation8 + $0xb8] sm:$0xff] %v432_v10  ;;  %v323_v13 = vadd.f32 %v322_v11, %v630_v23  ;;  %v436_v14 = vadd.f32 %v435_v12, %v632_v24 }
 0x144   :  { %v324_v15 = vpop.f32.mrf.mxu0  ;;  %v437_v16 = vpop.f32.mrf.mxu1 }
 0x145   :  { %470 = vst [vmem:[#allocation8 + $0xc0] sm:$0xff] %v323_v13  ;;  %472 = vst [vmem:[#allocation8 + $0xd0] sm:$0xff] %v436_v14  ;;  %v325_v17 = vadd.f32 %v324_v15, %v634_v25  ;;  %v438_v18 = vadd.f32 %v437_v16, %v636_v26 }
 0x146   :  { %v328_v19 = vpop.f32.mrf.mxu0  ;;  %v441_v20 = vpop.f32.mrf.mxu1 }
 0x147   :  { %471 = vst [vmem:[#allocation8 + $0xc8] sm:$0xff] %v325_v17  ;;  %473 = vst [vmem:[#allocation8 + $0xd8] sm:$0xff] %v438_v18  ;;  %v329_v21 = vadd.f32 %v328_v19, %v630_v23  ;;  %v442_v22 = vadd.f32 %v441_v20, %v632_v24 }
 0x148   :  { %v330_v27 = vpop.f32.mrf.mxu0  ;;  %v443_v28 = vpop.f32.mrf.mxu1 }
 0x149   :  { %474 = vst [vmem:[#allocation8 + $0xe0] sm:$0xff] %v329_v21  ;;  %476 = vst [vmem:[#allocation8 + $0xf0] sm:$0xff] %v442_v22  ;;  %v331_v29 = vadd.f32 %v330_v27, %v634_v25  ;;  %v444_v30 = vadd.f32 %v443_v28, %v636_v26 }
 0x14b   :  { %475 = vst [vmem:[#allocation8 + $0xe8] sm:$0xff] %v331_v29  ;;  %477 = vst [vmem:[#allocation8 + $0xf8] sm:$0xff] %v444_v30 }
 0x14c   :  { %575 = shalt.err (!%p572_p5)
}
 0x14d   :  { %489 = dma.vmem_to_hbm [thread:$0]  %s484_s2, 4096, %s679_s3, [#allocation4], %s591_s15, %s591_s15, %s592_s16  }
 0x14e   :  { %588 = dma.done.wait [#allocation4], 4096  }
 0x14f   :  { %589 = vsyncadd [#allocation4], 4294963200 }
 0x150   :  { %493 = vsyncpa [#allocation3], 1 }
 0x151   :  { %494 = vsyncpa [#allocation6], 1 }
 0x152   :  { %495 = vsyncpa [#allocation4], 1 }

</bundles_post_ra>
